<compile_context>
chip_gen: v5e
topology: v5e:2x2
jax: 0.10.0
libtpu: 0.0.40
codegen_flags: <defaults>
</compile_context>

<pallas_src>
import functools

import jax
import jax.numpy as jnp
from jax import lax
from jax.experimental import pallas as pl
from jax.experimental.pallas import tpu as pltpu


_SINGLE_BUF_KW = None


def _resident_kwargs():
    """BlockSpec kwargs requesting single-buffering for grid-invariant operands.

    Probed once with a tiny pallas_call; returns {} when unsupported so the main kernel
    still compiles (weights then just stay double-buffered).
    """
    global _SINGLE_BUF_KW
    if _SINGLE_BUF_KW is None:
        try:
            kw = dict(pipeline_mode=pl.Buffered(1))

            def _probe_kernel(w_ref, o_ref):
                o_ref[...] = w_ref[...]

            probe = pl.pallas_call(
                _probe_kernel,
                out_shape=jax.ShapeDtypeStruct((16, 128), jnp.float32),
                grid=(2,),
                in_specs=[pl.BlockSpec((8, 128), lambda i: (0, 0), **kw)],
                out_specs=pl.BlockSpec((8, 128), lambda i: (i, 0)),
            )
            jax.block_until_ready(probe(jnp.zeros((8, 128), jnp.float32)))
            _SINGLE_BUF_KW = kw
        except Exception:  # pragma: no cover - older JAX / unsupported pipeline_mode
            _SINGLE_BUF_KW = {}
    return _SINGLE_BUF_KW


def _attention_kernel(x_ref, wq_ref, wk_ref, wv_ref, bq_ref, bk_ref, bv_ref,
                      wp_ref, bp_ref, o_ref, kc_ref, vc_ref, ctx_ref,
                      *, heads, head_dim, tq, nq, cdt):
    qi = pl.program_id(1)

    # K/V projections: head-dense (N, C) @ (C, C) matmuls, computed once per batch element
    # (first query tile) and cached in VMEM scratch so query tiling never recomputes them.
    @pl.when(qi == 0)
    def _():
        xf = x_ref[...]                                                      # (N, C)
        kc_ref[...] = (jnp.dot(xf, wk_ref[...], preferred_element_type=jnp.float32)
                       + bk_ref[...]).astype(cdt)
        vc_ref[...] = (jnp.dot(xf, wv_ref[...], preferred_element_type=jnp.float32)
                       + bv_ref[...]).astype(cdt)

    if nq == 1:
        xq = x_ref[...]                                                      # (N, C)
    else:
        start = pl.multiple_of(qi * tq, tq)
        xq = x_ref[pl.ds(start, tq), :]                                      # (tq, C)

    # Head-dense Q projection (softmax scale + bias already folded into wq/bq wrapper-side).
    q_all = (jnp.dot(xq, wq_ref[...], preferred_element_type=jnp.float32)
             + bq_ref[...]).astype(cdt)                                      # (tq, C)
    k_all = kc_ref[...]                                                      # (N, C)
    v_all = vc_ref[...]                                                      # (N, C)

    # Static (fully unrolled) head loop: static lane slices, full scheduler visibility.
    for h in range(heads):
        lo, hi = h * head_dim, (h + 1) * head_dim
        qh = q_all[:, lo:hi]                                                 # (tq, D)
        kh = k_all[:, lo:hi]                                                 # (N, D)
        vh = v_all[:, lo:hi]                                                 # (N, D)

        # Scores: contract the head dim directly (no explicit transpose), f32 accumulation.
        s = lax.dot_general(qh, kh, (((1,), (1,)), ((), ())),
                            preferred_element_type=jnp.float32)              # (tq, N)

        # Softmax in f32; denominator reciprocal on the EUP (free slot).
        s = s - jnp.max(s, axis=-1, keepdims=True)
        p = jnp.exp(s)
        p = p * pl.reciprocal(jnp.sum(p, axis=-1, keepdims=True), approx=True)

        # Per-head context written to its lane slab of the head-dense scratch.
        ctx_ref[:, lo:hi] = jnp.dot(p.astype(cdt), vh,
                                    preferred_element_type=jnp.float32).astype(cdt)

    # ONE dense, lane-wide output projection over all heads.
    o_ref[...] = (jnp.dot(ctx_ref[...], wp_ref[...], preferred_element_type=jnp.float32)
                  + bp_ref[...]).astype(o_ref.dtype)


def attention_forward(x, w_qkv, b_qkv, w_proj, b_proj, *, heads, compute_dtype=None):
    """Multi-head self-attention matching torch's Attention.forward (eval mode).

    x: (B, N, C).  Weights in torch nn.Linear layout: w_qkv (3C, C), b_qkv (3C,),
    w_proj (C, C), b_proj (C,).  Matmuls run in `compute_dtype` (default: x.dtype; pass
    bf16 inputs for full MXU rate) with f32 accumulation.
    """
    B, N, C = x.shape
    assert C % heads == 0
    D = C // heads
    scale = float(D) ** -0.5
    cdt = jnp.dtype(compute_dtype) if compute_dtype is not None else x.dtype

    # torch nn.Linear: y = x @ W.T + b.  W_qkv.T is (C, 3C) with columns ordered (3, H, D),
    # so Q/K/V each occupy a contiguous (C, C) column block; the scale folds into Q (free).
    wt = jnp.asarray(w_qkv, jnp.float32).T                                   # (C, 3C)
    wq = (wt[:, 0 * C:1 * C] * scale).astype(cdt)
    wk = wt[:, 1 * C:2 * C].astype(cdt)
    wv = wt[:, 2 * C:3 * C].astype(cdt)
    b3 = jnp.asarray(b_qkv, jnp.float32)
    bq = (b3[0 * C:1 * C] * scale).reshape(1, C)                             # f32 (post-acc add)
    bk = b3[1 * C:2 * C].reshape(1, C)
    bv = b3[2 * C:3 * C].reshape(1, C)
    wp = jnp.asarray(w_proj, jnp.float32).T.astype(cdt)                      # (C, C)
    bp = jnp.asarray(b_proj, jnp.float32).reshape(1, C)

    xc = x.astype(cdt)

    resident_kw = _resident_kwargs()
    weight_bufs = 1 if resident_kw else 2

    itm = jnp.dtype(cdt).itemsize
    out_itm = jnp.dtype(x.dtype).itemsize

    def est_bytes(tile_q):
        # Double-buffered activation windows + weights + persistent scratch + the dominant
        # in-kernel transients (f32 scores + cdt probs + q_all).
        act_in = 2 * N * C * itm                                # full-seq x window
        act_out = 2 * tile_q * C * out_itm                      # output tile
        weights = weight_bufs * (4 * C * C * itm + 4 * C * 4)   # Wq/Wk/Wv/Wp + f32 biases
        scratch = (2 * N * C + tile_q * C) * itm                # K/V cache + ctx
        q_all = tile_q * C * (4 + itm)
        scores = tile_q * N * (4 + itm)
        return act_in + act_out + weights + scratch + q_all + scores

    # Generation-aware VMEM budget: query physical capacity, keep ~15% headroom.
    try:
        phys = int(pltpu.get_tpu_info().vmem_capacity_bytes)
    except Exception:  # pragma: no cover
        phys = 64 * 1024 * 1024                                  # conservative (v7x)
    budget = int(phys * 0.85)

    # Default: whole sequence per grid step (no K/V recompute, no pointless q tiling).
    # Tile the query axis only when the real working set exceeds the budget.
    tq = N
    if est_bytes(N) > budget:
        for cand in (2048, 1024, 512, 256, 128):
            if N % cand == 0 and est_bytes(cand) <= budget:
                tq = cand
                break
    nq = N // tq

    vmem_limit = int(min(max(int(est_bytes(tq) * 1.25), 32 * 1024 * 1024), budget))

    kernel = functools.partial(_attention_kernel, heads=heads, head_dim=D,
                               tq=tq, nq=nq, cdt=cdt)

    def resident(shape):
        return pl.BlockSpec(shape, lambda b, q: (0,) * len(shape), **resident_kw)

    return pl.pallas_call(
        kernel,
        out_shape=jax.ShapeDtypeStruct((B, N, C), x.dtype),
        grid=(B, nq),
        in_specs=[
            pl.BlockSpec((None, N, C), lambda b, q: (b, 0, 0)),   # x, full sequence (once)
            resident((C, C)),                                     # Wq (pre-scaled)
            resident((C, C)),                                     # Wk
            resident((C, C)),                                     # Wv
            resident((1, C)),                                     # bq (pre-scaled, f32)
            resident((1, C)),                                     # bk
            resident((1, C)),                                     # bv
            resident((C, C)),                                     # Wproj
            resident((1, C)),                                     # bproj
        ],
        out_specs=pl.BlockSpec((None, tq, C), lambda b, q: (b, q, 0)),
        scratch_shapes=[
            pltpu.VMEM((N, C), cdt),       # K cache (recomputed per batch element)
            pltpu.VMEM((N, C), cdt),       # V cache
            pltpu.VMEM((tq, C), cdt),      # per-head contexts, head-dense lanes
        ],
        compiler_params=pltpu.CompilerParams(
            dimension_semantics=("parallel", "arbitrary"),
            vmem_limit_bytes=vmem_limit),
    )(xc, wq, wk, wv, bq, bk, bv, wp, bp)


def reference_attention(x, w_qkv, b_qkv, w_proj, b_proj, *, heads):
    """Pure-JAX f32 reference mirroring the PyTorch forward (eval mode)."""
    B, N, C = x.shape
    D = C // heads
    scale = D ** (-0.5)
    qkv = x @ w_qkv.T + b_qkv                                        # (B, N, 3C)
    qkv = qkv.reshape(B, N, 3, heads, D).transpose(2, 0, 3, 1, 4)    # (3, B, H, N, D)
    q, k, v = qkv[0], qkv[1], qkv[2]
    attn = jnp.einsum("bhnd,bhmd->bhnm", q, k) * scale
    attn = jax.nn.softmax(attn, axis=-1)
    out = jnp.einsum("bhnm,bhmd->bhnd", attn, v)
    out = out.transpose(0, 2, 1, 3).reshape(B, N, C)
    return out @ w_proj.T + b_proj


if __name__ == "__main__":
    # Small shapes consistent with the module: B=2, N=8 tokens, C=32 channels, 4 heads.
    B, N, C, heads = 2, 8, 32, 4

    key = jax.random.PRNGKey(0)
    kx, kw1, kb1, kw2, kb2 = jax.random.split(key, 5)

    x = jax.random.normal(kx, (B, N, C), dtype=jnp.float32)
    # torch nn.Linear weights are (out_features, in_features).
    w_qkv = jax.random.normal(kw1, (3 * C, C), dtype=jnp.float32) * 0.05
    b_qkv = jax.random.normal(kb1, (3 * C,), dtype=jnp.float32) * 0.05
    w_proj = jax.random.normal(kw2, (C, C), dtype=jnp.float32) * 0.05
    b_proj = jax.random.normal(kb2, (C,), dtype=jnp.float32) * 0.05

    ref = reference_attention(x, w_qkv, b_qkv, w_proj, b_proj, heads=heads)

    # f32 path (approx reciprocal in softmax -> modest tolerance).
    out_f32 = jax.block_until_ready(
        attention_forward(x, w_qkv, b_qkv, w_proj, b_proj, heads=heads))
    assert out_f32.shape == (B, N, C)
    assert jnp.allclose(out_f32, ref, atol=2e-3, rtol=2e-3), "f32 mismatch vs. reference"

    # bf16 fast path (native MXU dtype, f32 accumulation).
    out_bf16 = jax.block_until_ready(
        attention_forward(x.astype(jnp.bfloat16), w_qkv, b_qkv, w_proj, b_proj,
                          heads=heads))
    assert out_bf16.shape == (B, N, C)
    assert jnp.allclose(out_bf16.astype(jnp.float32), ref, atol=5e-2, rtol=5e-2), \
        "bf16 mismatch vs. reference"

    print("KERNEL_OK")
</pallas_src>

<mosaic_0001>
module attributes {stable_mosaic.version = 11 : i64} {
  func.func @_probe_kernel(%arg0: i32, %arg1: memref<8x128xf32, #tpu.memory_space<vmem>>, %arg2: memref<8x128xf32, #tpu.memory_space<vmem>>) attributes {dimension_semantics = [#tpu.dimension_semantics<arbitrary>], iteration_bounds = array<i64: 2>, scalar_prefetch = 0 : i64, scratch_operands = 0 : i64, tpu.core_type = #tpu.core_type<tc>, window_params = [{pipeline_mode = #tpu.pipeline_mode<synchronous>, transform_indices = @transform_0, window_bounds = array<i64: 8, 128>}, {transform_indices = @transform_1, window_bounds = array<i64: 8, 128>}]} {
    %c0 = arith.constant 0 : index
    %c0_0 = arith.constant 0 : index
    %0 = vector.load %arg1[%c0, %c0_0] : memref<8x128xf32, #tpu.memory_space<vmem>>, vector<8x128xf32>
    %c0_1 = arith.constant 0 : index
    %c0_2 = arith.constant 0 : index
    %1 = vector.load %arg2[%c0_1, %c0_2] : memref<8x128xf32, #tpu.memory_space<vmem>>, vector<8x128xf32>
    tpu.vector_store %arg2[%c0_1, %c0_2], %0 {strides = array<i32>} : memref<8x128xf32, #tpu.memory_space<vmem>>, vector<8x128xf32>,
    return
  }
  func.func @transform_0(%arg0: i32) -> (i32, i32) {
    %c0_i32 = arith.constant 0 : i32
    %c0_i32_0 = arith.constant 0 : i32
    %c0_i32_1 = arith.constant 0 : i32
    return %c0_i32, %c0_i32_0 : i32, i32
  }
  func.func @transform_1(%arg0: i32) -> (i32, i32) {
    %c0_i32 = arith.constant 0 : i32
    %c0_i32_0 = arith.constant 0 : i32
    return %arg0, %c0_i32 : i32, i32
  }
}

module attributes {stable_mosaic.version = 11 : i64} {
  func.func @_attention_kernel(%arg0: i32, %arg1: i32, %arg2: memref<1x8x32xf32, #tpu.memory_space<vmem>>, %arg3: memref<32x32xf32, #tpu.memory_space<vmem>>, %arg4: memref<32x32xf32, #tpu.memory_space<vmem>>, %arg5: memref<32x32xf32, #tpu.memory_space<vmem>>, %arg6: memref<1x32xf32, #tpu.memory_space<vmem>>, %arg7: memref<1x32xf32, #tpu.memory_space<vmem>>, %arg8: memref<1x32xf32, #tpu.memory_space<vmem>>, %arg9: memref<32x32xf32, #tpu.memory_space<vmem>>, %arg10: memref<1x32xf32, #tpu.memory_space<vmem>>, %arg11: memref<1x8x32xf32, #tpu.memory_space<vmem>>, %arg12: memref<8x32xf32, #tpu.memory_space<vmem>>, %arg13: memref<8x32xf32, #tpu.memory_space<vmem>>, %arg14: memref<8x32xf32, #tpu.memory_space<vmem>>) attributes {dimension_semantics = [#tpu.dimension_semantics<parallel>, #tpu.dimension_semantics<arbitrary>], iteration_bounds = array<i64: 2, 1>, scalar_prefetch = 0 : i64, scratch_operands = 3 : i64, tpu.core_type = #tpu.core_type<tc>, window_params = [{transform_indices = @transform_0, window_bounds = array<i64: 1, 8, 32>}, {pipeline_mode = #tpu.pipeline_mode<synchronous>, transform_indices = @transform_1, window_bounds = array<i64: 32, 32>}, {pipeline_mode = #tpu.pipeline_mode<synchronous>, transform_indices = @transform_2, window_bounds = array<i64: 32, 32>}, {pipeline_mode = #tpu.pipeline_mode<synchronous>, transform_indices = @transform_3, window_bounds = array<i64: 32, 32>}, {pipeline_mode = #tpu.pipeline_mode<synchronous>, transform_indices = @transform_4, window_bounds = array<i64: 1, 32>}, {pipeline_mode = #tpu.pipeline_mode<synchronous>, transform_indices = @transform_5, window_bounds = array<i64: 1, 32>}, {pipeline_mode = #tpu.pipeline_mode<synchronous>, transform_indices = @transform_6, window_bounds = array<i64: 1, 32>}, {pipeline_mode = #tpu.pipeline_mode<synchronous>, transform_indices = @transform_7, window_bounds = array<i64: 32, 32>}, {pipeline_mode = #tpu.pipeline_mode<synchronous>, transform_indices = @transform_8, window_bounds = array<i64: 1, 32>}, {transform_indices = @transform_9, window_bounds = array<i64: 1, 8, 32>}]} {
    %c0_i32 = arith.constant 0 : i32
    %0 = arith.cmpi eq, %arg1, %c0_i32 : i32
    %1 = arith.extui %0 : i1 to i32
    %c0_i32_0 = arith.constant 0 : i32
    %2 = arith.cmpi ne, %1, %c0_i32_0 : i32
    scf.if %2 {
      %c0_42 = arith.constant 0 : index
      %c0_43 = arith.constant 0 : index
      %c0_44 = arith.constant 0 : index
      %85 = vector.load %arg2[%c0_42, %c0_43, %c0_44] : memref<1x8x32xf32, #tpu.memory_space<vmem>>, vector<1x8x32xf32>
      %86 = vector.shape_cast %85 : vector<1x8x32xf32> to vector<8x32xf32>
      %c0_45 = arith.constant 0 : index
      %c0_46 = arith.constant 0 : index
      %87 = vector.load %arg4[%c0_45, %c0_46] : memref<32x32xf32, #tpu.memory_space<vmem>>, vector<32x32xf32>
      %cst_47 = arith.constant dense<0.000000e+00> : vector<8x32xf32>
      %88 = tpu.matmul %86, %87, %cst_47 {dimension_numbers = #tpu.dot_dimension_numbers<[1], [0], [0], [1], [0, 0, 1, 1], [], []>} : vector<8x32xf32>, vector<32x32xf32>, vector<8x32xf32> -> vector<8x32xf32>
      %c0_48 = arith.constant 0 : index
      %c0_49 = arith.constant 0 : index
      %89 = vector.load %arg7[%c0_48, %c0_49] : memref<1x32xf32, #tpu.memory_space<vmem>>, vector<1x32xf32>
      %90 = vector.broadcast %89 : vector<1x32xf32> to vector<8x32xf32>
      %91 = arith.addf %88, %90 : vector<8x32xf32>
      %c0_50 = arith.constant 0 : index
      %c0_51 = arith.constant 0 : index
      %92 = vector.load %arg12[%c0_50, %c0_51] : memref<8x32xf32, #tpu.memory_space<vmem>>, vector<8x32xf32>
      tpu.vector_store %arg12[%c0_50, %c0_51], %91 {strides = array<i32>} : memref<8x32xf32, #tpu.memory_space<vmem>>, vector<8x32xf32>,
      %c0_52 = arith.constant 0 : index
      %c0_53 = arith.constant 0 : index
      %93 = vector.load %arg5[%c0_52, %c0_53] : memref<32x32xf32, #tpu.memory_space<vmem>>, vector<32x32xf32>
      %cst_54 = arith.constant dense<0.000000e+00> : vector<8x32xf32>
      %94 = tpu.matmul %86, %93, %cst_54 {dimension_numbers = #tpu.dot_dimension_numbers<[1], [0], [0], [1], [0, 0, 1, 1], [], []>} : vector<8x32xf32>, vector<32x32xf32>, vector<8x32xf32> -> vector<8x32xf32>
      %c0_55 = arith.constant 0 : index
      %c0_56 = arith.constant 0 : index
      %95 = vector.load %arg8[%c0_55, %c0_56] : memref<1x32xf32, #tpu.memory_space<vmem>>, vector<1x32xf32>
      %96 = vector.broadcast %95 : vector<1x32xf32> to vector<8x32xf32>
      %97 = arith.addf %94, %96 : vector<8x32xf32>
      %c0_57 = arith.constant 0 : index
      %c0_58 = arith.constant 0 : index
      %98 = vector.load %arg13[%c0_57, %c0_58] : memref<8x32xf32, #tpu.memory_space<vmem>>, vector<8x32xf32>
      tpu.vector_store %arg13[%c0_57, %c0_58], %97 {strides = array<i32>} : memref<8x32xf32, #tpu.memory_space<vmem>>, vector<8x32xf32>,
    } else {
    }
    %c0 = arith.constant 0 : index
    %c0_1 = arith.constant 0 : index
    %c0_2 = arith.constant 0 : index
    %3 = vector.load %arg2[%c0, %c0_1, %c0_2] : memref<1x8x32xf32, #tpu.memory_space<vmem>>, vector<1x8x32xf32>
    %4 = vector.shape_cast %3 : vector<1x8x32xf32> to vector<8x32xf32>
    %c0_3 = arith.constant 0 : index
    %c0_4 = arith.constant 0 : index
    %5 = vector.load %arg3[%c0_3, %c0_4] : memref<32x32xf32, #tpu.memory_space<vmem>>, vector<32x32xf32>
    %cst = arith.constant dense<0.000000e+00> : vector<8x32xf32>
    %6 = tpu.matmul %4, %5, %cst {dimension_numbers = #tpu.dot_dimension_numbers<[1], [0], [0], [1], [0, 0, 1, 1], [], []>} : vector<8x32xf32>, vector<32x32xf32>, vector<8x32xf32> -> vector<8x32xf32>
    %c0_5 = arith.constant 0 : index
    %c0_6 = arith.constant 0 : index
    %7 = vector.load %arg6[%c0_5, %c0_6] : memref<1x32xf32, #tpu.memory_space<vmem>>, vector<1x32xf32>
    %8 = vector.broadcast %7 : vector<1x32xf32> to vector<8x32xf32>
    %9 = arith.addf %6, %8 : vector<8x32xf32>
    %c0_7 = arith.constant 0 : index
    %c0_8 = arith.constant 0 : index
    %10 = vector.load %arg12[%c0_7, %c0_8] : memref<8x32xf32, #tpu.memory_space<vmem>>, vector<8x32xf32>
    %c0_9 = arith.constant 0 : index
    %c0_10 = arith.constant 0 : index
    %11 = vector.load %arg13[%c0_9, %c0_10] : memref<8x32xf32, #tpu.memory_space<vmem>>, vector<8x32xf32>
    %12 = vector.extract_strided_slice %9 {offsets = [0, 0], sizes = [8, 8], strides = [1, 1]} : vector<8x32xf32> to vector<8x8xf32>
    %13 = vector.extract_strided_slice %10 {offsets = [0, 0], sizes = [8, 8], strides = [1, 1]} : vector<8x32xf32> to vector<8x8xf32>
    %14 = vector.extract_strided_slice %11 {offsets = [0, 0], sizes = [8, 8], strides = [1, 1]} : vector<8x32xf32> to vector<8x8xf32>
    %cst_11 = arith.constant dense<0.000000e+00> : vector<8x8xf32>
    %15 = tpu.matmul %12, %13, %cst_11 {dimension_numbers = #tpu.dot_dimension_numbers<[1], [1], [0], [0], [0, 0, 1, 0], [], []>} : vector<8x8xf32>, vector<8x8xf32>, vector<8x8xf32> -> vector<8x8xf32>
    %cst_12 = arith.constant dense<0xFF800000> : vector<8xf32>
    %16 = vector.multi_reduction <maximumf>, %15, %cst_12 [1] : vector<8x8xf32> to vector<8xf32>
    %17 = vector.shape_cast %16 : vector<8xf32> to vector<8x1xf32>
    %18 = vector.broadcast %17 : vector<8x1xf32> to vector<8x8xf32>
    %19 = arith.subf %15, %18 : vector<8x8xf32>
    %20 = math.exp %19 : vector<8x8xf32>
    %cst_13 = arith.constant dense<0.000000e+00> : vector<8xf32>
    %21 = vector.multi_reduction <add>, %20, %cst_13 [1] : vector<8x8xf32> to vector<8xf32>
    %22 = vector.shape_cast %21 : vector<8xf32> to vector<8x1xf32>
    %23 = tpu.reciprocal %22 {approx = true} : vector<8x1xf32> -> vector<8x1xf32>
    %24 = vector.broadcast %23 : vector<8x1xf32> to vector<8x8xf32>
    %25 = arith.mulf %20, %24 : vector<8x8xf32>
    %cst_14 = arith.constant dense<0.000000e+00> : vector<8x8xf32>
    %26 = tpu.matmul %25, %14, %cst_14 {dimension_numbers = #tpu.dot_dimension_numbers<[1], [0], [0], [1], [0, 0, 1, 1], [], []>} : vector<8x8xf32>, vector<8x8xf32>, vector<8x8xf32> -> vector<8x8xf32>
    %c0_15 = arith.constant 0 : index
    %c0_16 = arith.constant 0 : index
    %27 = vector.load %arg14[%c0_15, %c0_16] : memref<8x32xf32, #tpu.memory_space<vmem>>, vector<8x8xf32>
    tpu.vector_store %arg14[%c0_15, %c0_16], %26 {strides = array<i32>} : memref<8x32xf32, #tpu.memory_space<vmem>>, vector<8x8xf32>,
    %28 = vector.extract_strided_slice %9 {offsets = [0, 8], sizes = [8, 8], strides = [1, 1]} : vector<8x32xf32> to vector<8x8xf32>
    %29 = vector.extract_strided_slice %10 {offsets = [0, 8], sizes = [8, 8], strides = [1, 1]} : vector<8x32xf32> to vector<8x8xf32>
    %30 = vector.extract_strided_slice %11 {offsets = [0, 8], sizes = [8, 8], strides = [1, 1]} : vector<8x32xf32> to vector<8x8xf32>
    %cst_17 = arith.constant dense<0.000000e+00> : vector<8x8xf32>
    %31 = tpu.matmul %28, %29, %cst_17 {dimension_numbers = #tpu.dot_dimension_numbers<[1], [1], [0], [0], [0, 0, 1, 0], [], []>} : vector<8x8xf32>, vector<8x8xf32>, vector<8x8xf32> -> vector<8x8xf32>
    %cst_18 = arith.constant dense<0xFF800000> : vector<8xf32>
    %32 = vector.multi_reduction <maximumf>, %31, %cst_18 [1] : vector<8x8xf32> to vector<8xf32>
    %33 = vector.shape_cast %32 : vector<8xf32> to vector<8x1xf32>
    %34 = vector.broadcast %33 : vector<8x1xf32> to vector<8x8xf32>
    %35 = arith.subf %31, %34 : vector<8x8xf32>
    %36 = math.exp %35 : vector<8x8xf32>
    %cst_19 = arith.constant dense<0.000000e+00> : vector<8xf32>
    %37 = vector.multi_reduction <add>, %36, %cst_19 [1] : vector<8x8xf32> to vector<8xf32>
    %38 = vector.shape_cast %37 : vector<8xf32> to vector<8x1xf32>
    %39 = tpu.reciprocal %38 {approx = true} : vector<8x1xf32> -> vector<8x1xf32>
    %40 = vector.broadcast %39 : vector<8x1xf32> to vector<8x8xf32>
    %41 = arith.mulf %36, %40 : vector<8x8xf32>
    %cst_20 = arith.constant dense<0.000000e+00> : vector<8x8xf32>
    %42 = tpu.matmul %41, %30, %cst_20 {dimension_numbers = #tpu.dot_dimension_numbers<[1], [0], [0], [1], [0, 0, 1, 1], [], []>} : vector<8x8xf32>, vector<8x8xf32>, vector<8x8xf32> -> vector<8x8xf32>
    %c0_21 = arith.constant 0 : index
    %c8 = arith.constant 8 : index
    %43 = vector.load %arg14[%c0_21, %c8] : memref<8x32xf32, #tpu.memory_space<vmem>>, vector<8x8xf32>
    tpu.vector_store %arg14[%c0_21, %c8], %42 {strides = array<i32>} : memref<8x32xf32, #tpu.memory_space<vmem>>, vector<8x8xf32>,
    %44 = vector.extract_strided_slice %9 {offsets = [0, 16], sizes = [8, 8], strides = [1, 1]} : vector<8x32xf32> to vector<8x8xf32>
    %45 = vector.extract_strided_slice %10 {offsets = [0, 16], sizes = [8, 8], strides = [1, 1]} : vector<8x32xf32> to vector<8x8xf32>
    %46 = vector.extract_strided_slice %11 {offsets = [0, 16], sizes = [8, 8], strides = [1, 1]} : vector<8x32xf32> to vector<8x8xf32>
    %cst_22 = arith.constant dense<0.000000e+00> : vector<8x8xf32>
    %47 = tpu.matmul %44, %45, %cst_22 {dimension_numbers = #tpu.dot_dimension_numbers<[1], [1], [0], [0], [0, 0, 1, 0], [], []>} : vector<8x8xf32>, vector<8x8xf32>, vector<8x8xf32> -> vector<8x8xf32>
    %cst_23 = arith.constant dense<0xFF800000> : vector<8xf32>
    %48 = vector.multi_reduction <maximumf>, %47, %cst_23 [1] : vector<8x8xf32> to vector<8xf32>
    %49 = vector.shape_cast %48 : vector<8xf32> to vector<8x1xf32>
    %50 = vector.broadcast %49 : vector<8x1xf32> to vector<8x8xf32>
    %51 = arith.subf %47, %50 : vector<8x8xf32>
    %52 = math.exp %51 : vector<8x8xf32>
    %cst_24 = arith.constant dense<0.000000e+00> : vector<8xf32>
    %53 = vector.multi_reduction <add>, %52, %cst_24 [1] : vector<8x8xf32> to vector<8xf32>
    %54 = vector.shape_cast %53 : vector<8xf32> to vector<8x1xf32>
    %55 = tpu.reciprocal %54 {approx = true} : vector<8x1xf32> -> vector<8x1xf32>
    %56 = vector.broadcast %55 : vector<8x1xf32> to vector<8x8xf32>
    %57 = arith.mulf %52, %56 : vector<8x8xf32>
    %cst_25 = arith.constant dense<0.000000e+00> : vector<8x8xf32>
    %58 = tpu.matmul %57, %46, %cst_25 {dimension_numbers = #tpu.dot_dimension_numbers<[1], [0], [0], [1], [0, 0, 1, 1], [], []>} : vector<8x8xf32>, vector<8x8xf32>, vector<8x8xf32> -> vector<8x8xf32>
    %c0_26 = arith.constant 0 : index
    %c16 = arith.constant 16 : index
    %59 = vector.load %arg14[%c0_26, %c16] : memref<8x32xf32, #tpu.memory_space<vmem>>, vector<8x8xf32>
    tpu.vector_store %arg14[%c0_26, %c16], %58 {strides = array<i32>} : memref<8x32xf32, #tpu.memory_space<vmem>>, vector<8x8xf32>,
    %60 = vector.extract_strided_slice %9 {offsets = [0, 24], sizes = [8, 8], strides = [1, 1]} : vector<8x32xf32> to vector<8x8xf32>
    %61 = vector.extract_strided_slice %10 {offsets = [0, 24], sizes = [8, 8], strides = [1, 1]} : vector<8x32xf32> to vector<8x8xf32>
    %62 = vector.extract_strided_slice %11 {offsets = [0, 24], sizes = [8, 8], strides = [1, 1]} : vector<8x32xf32> to vector<8x8xf32>
    %cst_27 = arith.constant dense<0.000000e+00> : vector<8x8xf32>
    %63 = tpu.matmul %60, %61, %cst_27 {dimension_numbers = #tpu.dot_dimension_numbers<[1], [1], [0], [0], [0, 0, 1, 0], [], []>} : vector<8x8xf32>, vector<8x8xf32>, vector<8x8xf32> -> vector<8x8xf32>
    %cst_28 = arith.constant dense<0xFF800000> : vector<8xf32>
    %64 = vector.multi_reduction <maximumf>, %63, %cst_28 [1] : vector<8x8xf32> to vector<8xf32>
    %65 = vector.shape_cast %64 : vector<8xf32> to vector<8x1xf32>
    %66 = vector.broadcast %65 : vector<8x1xf32> to vector<8x8xf32>
    %67 = arith.subf %63, %66 : vector<8x8xf32>
    %68 = math.exp %67 : vector<8x8xf32>
    %cst_29 = arith.constant dense<0.000000e+00> : vector<8xf32>
    %69 = vector.multi_reduction <add>, %68, %cst_29 [1] : vector<8x8xf32> to vector<8xf32>
    %70 = vector.shape_cast %69 : vector<8xf32> to vector<8x1xf32>
    %71 = tpu.reciprocal %70 {approx = true} : vector<8x1xf32> -> vector<8x1xf32>
    %72 = vector.broadcast %71 : vector<8x1xf32> to vector<8x8xf32>
    %73 = arith.mulf %68, %72 : vector<8x8xf32>
    %cst_30 = arith.constant dense<0.000000e+00> : vector<8x8xf32>
    %74 = tpu.matmul %73, %62, %cst_30 {dimension_numbers = #tpu.dot_dimension_numbers<[1], [0], [0], [1], [0, 0, 1, 1], [], []>} : vector<8x8xf32>, vector<8x8xf32>, vector<8x8xf32> -> vector<8x8xf32>
    %c0_31 = arith.constant 0 : index
    %c24 = arith.constant 24 : index
    %75 = vector.load %arg14[%c0_31, %c24] : memref<8x32xf32, #tpu.memory_space<vmem>>, vector<8x8xf32>
    tpu.vector_store %arg14[%c0_31, %c24], %74 {strides = array<i32>} : memref<8x32xf32, #tpu.memory_space<vmem>>, vector<8x8xf32>,
    %c0_32 = arith.constant 0 : index
    %c0_33 = arith.constant 0 : index
    %76 = vector.load %arg14[%c0_32, %c0_33] : memref<8x32xf32, #tpu.memory_space<vmem>>, vector<8x32xf32>
    %c0_34 = arith.constant 0 : index
    %c0_35 = arith.constant 0 : index
    %77 = vector.load %arg9[%c0_34, %c0_35] : memref<32x32xf32, #tpu.memory_space<vmem>>, vector<32x32xf32>
    %cst_36 = arith.constant dense<0.000000e+00> : vector<8x32xf32>
    %78 = tpu.matmul %76, %77, %cst_36 {dimension_numbers = #tpu.dot_dimension_numbers<[1], [0], [0], [1], [0, 0, 1, 1], [], []>} : vector<8x32xf32>, vector<32x32xf32>, vector<8x32xf32> -> vector<8x32xf32>
    %c0_37 = arith.constant 0 : index
    %c0_38 = arith.constant 0 : index
    %79 = vector.load %arg10[%c0_37, %c0_38] : memref<1x32xf32, #tpu.memory_space<vmem>>, vector<1x32xf32>
    %80 = vector.broadcast %79 : vector<1x32xf32> to vector<8x32xf32>
    %81 = arith.addf %78, %80 : vector<8x32xf32>
    %c0_39 = arith.constant 0 : index
    %c0_40 = arith.constant 0 : index
    %c0_41 = arith.constant 0 : index
    %82 = vector.load %arg11[%c0_39, %c0_40, %c0_41] : memref<1x8x32xf32, #tpu.memory_space<vmem>>, vector<1x8x32xf32>
    %83 = vector.shape_cast %82 : vector<1x8x32xf32> to vector<8x32xf32>
    %84 = vector.shape_cast %81 : vector<8x32xf32> to vector<1x8x32xf32>
    tpu.vector_store %arg11[%c0_39, %c0_40, %c0_41], %84 {strides = array<i32>} : memref<1x8x32xf32, #tpu.memory_space<vmem>>, vector<1x8x32xf32>,
    return
  }
  func.func @transform_0(%arg0: i32, %arg1: i32) -> (i32, i32, i32) {
    %c0_i32 = arith.constant 0 : i32
    %c0_i32_0 = arith.constant 0 : i32
    %c0_i32_1 = arith.constant 0 : i32
    return %arg0, %c0_i32, %c0_i32_0 : i32, i32, i32
  }
  func.func @transform_1(%arg0: i32, %arg1: i32) -> (i32, i32) {
    %c0_i32 = arith.constant 0 : i32
    %c0_i32_0 = arith.constant 0 : i32
    %c0_i32_1 = arith.constant 0 : i32
    return %c0_i32, %c0_i32_0 : i32, i32
  }
  func.func @transform_2(%arg0: i32, %arg1: i32) -> (i32, i32) {
    %c0_i32 = arith.constant 0 : i32
    %c0_i32_0 = arith.constant 0 : i32
    %c0_i32_1 = arith.constant 0 : i32
    return %c0_i32, %c0_i32_0 : i32, i32
  }
  func.func @transform_3(%arg0: i32, %arg1: i32) -> (i32, i32) {
    %c0_i32 = arith.constant 0 : i32
    %c0_i32_0 = arith.constant 0 : i32
    %c0_i32_1 = arith.constant 0 : i32
    return %c0_i32, %c0_i32_0 : i32, i32
  }
  func.func @transform_4(%arg0: i32, %arg1: i32) -> (i32, i32) {
    %c0_i32 = arith.constant 0 : i32
    %c0_i32_0 = arith.constant 0 : i32
    %c0_i32_1 = arith.constant 0 : i32
    return %c0_i32, %c0_i32_0 : i32, i32
  }
  func.func @transform_5(%arg0: i32, %arg1: i32) -> (i32, i32) {
    %c0_i32 = arith.constant 0 : i32
    %c0_i32_0 = arith.constant 0 : i32
    %c0_i32_1 = arith.constant 0 : i32
    return %c0_i32, %c0_i32_0 : i32, i32
  }
  func.func @transform_6(%arg0: i32, %arg1: i32) -> (i32, i32) {
    %c0_i32 = arith.constant 0 : i32
    %c0_i32_0 = arith.constant 0 : i32
    %c0_i32_1 = arith.constant 0 : i32
    return %c0_i32, %c0_i32_0 : i32, i32
  }
  func.func @transform_7(%arg0: i32, %arg1: i32) -> (i32, i32) {
    %c0_i32 = arith.constant 0 : i32
    %c0_i32_0 = arith.constant 0 : i32
    %c0_i32_1 = arith.constant 0 : i32
    return %c0_i32, %c0_i32_0 : i32, i32
  }
  func.func @transform_8(%arg0: i32, %arg1: i32) -> (i32, i32) {
    %c0_i32 = arith.constant 0 : i32
    %c0_i32_0 = arith.constant 0 : i32
    %c0_i32_1 = arith.constant 0 : i32
    return %c0_i32, %c0_i32_0 : i32, i32
  }
  func.func @transform_9(%arg0: i32, %arg1: i32) -> (i32, i32, i32) {
    %c0_i32 = arith.constant 0 : i32
    %c0_i32_0 = arith.constant 0 : i32
    return %arg0, %arg1, %c0_i32 : i32, i32, i32
  }
}

</mosaic_0001>

<bundles_post_ra>
// kernel: tpu_custom_call.1
= control target key start
LH: loop header
LB: loop body
LE: loop exit
PB: predicated region body
PF: predicated region fallthrough
CT: control target
= control target key end

     0   :  { %6 = vsyncpa [#allocation3], 0  ;;  %s440_s0 = inlined_call_operand.hbm [shape: f32[8,128], index: 0, kind: input, shape index: {}]   ;;  %s441_s1 = inlined_call_operand.hbm [shape: f32[16,128], index: 1, kind: output, shape index: {}]  }
   0x1   :  { %7 = vsyncpa [#allocation4], 0 }
   0x2   :  { %9 = vsyncpa [#allocation4 + $0x1], 0  ;;  %s356_s6 = smov 0   ;;  %s358_s7 = smov 0  }
   0x3   :  { %s360_s8 = smov 0   ;;  %s362_s9 = smov 0  }
   0x4 LB: > { %s377_s10 = sadd.s32 4294967295, %s343_s9   ;;  %s187_s11 = sadd.s32 4294967294, %s343_s9   ;;  %s343_s9 = sphi %s362_s9, %s447_s9   ;;  %s339_s8 = sphi %s360_s8, %s446_s8   ;;  %s335_s7 = sphi %s358_s7, %s445_s7   ;;  %s331_s6 = sphi %s356_s6, %s444_s6  }
   0x5   : > { %s381_s12 = sadd.s32 1, %s343_s9   ;;  %s43_s13 = sadd.s32 1, %s339_s8 }
   0x6   : > { %s40_s14 = ssub.s32 %s343_s9, %s381_s12  ;;  %p53_p0 = scmp.ne.s32.totalorder %s339_s8, %s335_s7 }
   0x7   : > { %p41_p1 = scmp.eq.s32.totalorder %s40_s14, 0  ;;  %p54_p2 = scmp.eq.s32.totalorder %s377_s10, 1 }
   0x8   : > { %p59_p3 = scmp.ne.s32.totalorder %s335_s7, %s331_s6  ;;  %p60_p4 = scmp.eq.s32.totalorder %s187_s11, 1 }
   0x9   : > { %s392_s15 = scalar_select %p41_p1, %s339_s8, %s43_s13  }
   0xa   : > { %p394_p5 = por %p54_p2, %p53_p0  ;;  %p398_p6 = por %p60_p4, %p59_p3 }
   0xb   : > { %p188_p7 = scmp.ge.s32.totalorder %s343_s9, 1  ;;  %p67_p8 = scmp.lt.s32.totalorder %s343_s9, 3 }
   0xc   : > { %p211_p9 = scmp.eq.s32.totalorder %s377_s10, 0  ;;  %s79_s20 = sshll.u32 %s440_s0, 4  ;;  %s80_s20 = int_to_ptr.hbm [resolvable:$true] %s79_s20 }
   0xd   : > { %p68_p10 = pnand %p188_p7, %p67_p8  ;;  %s345_s21 = smov [#allocation2]  }
   0xe   : > { %s81_s22 = sshll.u32 %s345_s21, 4  ;;  %s82_s22 = int_to_ptr.vmem [resolvable:$true] %s81_s22 }
   0xf   : > { %p203_p11 = pneg %p68_p10  ;;  %94 = sbr.rel (%p68_p10) target bundleno = 37 (0x25), region = 24 }
  0x11   : > { %p204_p12 = pnand %p211_p9, %p203_p11 }
  0x13   : > { %206 = dma.hbm_to_vmem [thread:$0]  (!%p204_p12), %s80_s20, 128, %s82_s22, [#allocation3]  }
  0x14   : > { %322 = dma.done.wait (%p211_p9), [#allocation3], 128  }
  0x15   : > { %324 = vsyncadd (%p211_p9), [#allocation3], 4294967168  ;;  %s107_s23 = sand.u32 1, %s335_s7   ;;  %s194_s24 = sshll.u32 %s377_s10, 3  ;;  %v110_v0 = vld [vmem:[#allocation2] sm:$0xff] }
  0x16   : > { %s192_s25 = sshll.u32 %s107_s23, 3  ;;  %s123_s28 = scalar_lea.hbm %s441_s1, %s194_s24 }
  0x17   : > { %s109_s29 = scalar_lea.vmem [#allocation5], %s192_s25  ;;  %s127_s2 = sshll.u32 %s123_s28, 4  ;;  %s128_s2 = int_to_ptr.hbm [resolvable:$true] %s127_s2 }
  0x18   : > { %s125_s30 = sshll.u32 %s109_s29, 4  ;;  %111 = vst [vmem:[%s109_s29] sm:$0xff] %v110_v0  ;;  %s113_s3 = scalar_lea.sflag [#allocation4], %s107_s23  ;;  %s126_s30 = int_to_ptr.vmem [resolvable:$true] %s125_s30 }
  0x19   : > { %s291_s4 = sshra.s32 %s128_s2, 4  ;;  %s297_s13 = scalar_lea.hbm %s441_s1, 16  ;;  %s292_s4 = int_to_ptr.hbm [resolvable:$true] %s291_s4 }
  0x1a   : > { %s293_s5 = scalar_lea.hbm %s292_s4, 8  ;;  %p298_p2 = scmp.lt.s32.totalorder %s292_s4, %s441_s1 }
  0x1b   : > { %p294_p13 = scmp.ne.s32.totalorder %s292_s4, %s293_s5  ;;  %p299_p3 = scmp.lt.s32.totalorder %s297_s13, %s293_s5 }
  0x1d   : > { %p295_p0 = pnand %p294_p13, %p394_p5  ;;  %p300_p4 = por %p299_p3, %p298_p2 }
  0x1f   : > { %p296_p1 = pneg %p295_p0 }
  0x21   : > { %p301_p7 = pnand %p300_p4, %p296_p1 }
  0x23   : > { %304 = shalt.err (!%p301_p7)
}
  0x24   : > { %201 = dma.vmem_to_hbm [thread:$0]  (%p394_p5), %s126_s30, 128, %s128_s2, %s113_s3  }
  0x25 PF: > { %p213_p8 = scmp.ge.s32.totalorder %s343_s9, 2  ;;  %s139_s19 = sand.u32 1, %s331_s6  }
  0x26   : > { %s140_s20 = scalar_lea.sflag [#allocation4], %s139_s19 }
  0x27   : > { %p208_p9 = pnand %p213_p8, %p398_p6 }
  0x29   : > { %p209_p10 = pneg %p208_p9 }
  0x2b   : > { %326 = dma.done.wait (%p209_p10), %s140_s20, 128  }
  0x2c   : > { %328 = vsyncadd (%p209_p10), %s140_s20, 4294967168  ;;  %p12_p11 = scmp.ge.s32.totalorder %s381_s12, 4   ;;  %s444_s6 = smov %s335_s7 }
  0x2d   : > { %s445_s7 = smov %s339_s8  ;;  %s446_s8 = smov %s392_s15 }
  0x2e   : > { %s447_s9 = smov %s381_s12  ;;  %14 = sbr.rel (!%p12_p11) target bundleno = 4 (0x4), region = 61 }
  0x33   :  { %146 = vsyncpa [#allocation3], 1 }
  0x34   :  { %148 = vsyncpa [#allocation3 + $0x1], 1 }
  0x35   :  { %149 = vsyncpa [#allocation4], 1 }
  0x36   :  { %151 = vsyncpa [#allocation4 + $0x1], 1 }

// kernel: tpu_custom_call.1
= control target key start
LH: loop header
LB: loop body
LE: loop exit
PB: predicated region body
PF: predicated region fallthrough
CT: control target
= control target key end

     0   :  { %s1666_s0 = inlined_call_operand.hbm [shape: f32[2,8,32], index: 0, kind: input, shape index: {}]   ;;  %s1667_s1 = inlined_call_operand.hbm [shape: f32[32,32], index: 1, kind: input, shape index: {}]   ;;  %s1668_s2 = inlined_call_operand.hbm [shape: f32[32,32], index: 2, kind: input, shape index: {}]   ;;  %s1669_s3 = inlined_call_operand.hbm [shape: f32[32,32], index: 3, kind: input, shape index: {}]   ;;  %s1670_s4 = inlined_call_operand.vmem [shape: f32[1,32], index: 4, kind: input, shape index: {}]   ;;  %s1671_s5 = inlined_call_operand.vmem [shape: f32[1,32], index: 5, kind: input, shape index: {}]   ;;  %s1672_s6 = inlined_call_operand.vmem [shape: f32[1,32], index: 6, kind: input, shape index: {}]   ;;  %s1673_s7 = inlined_call_operand.hbm [shape: f32[32,32], index: 7, kind: input, shape index: {}]   ;;  %s1674_s8 = inlined_call_operand.vmem [shape: f32[1,32], index: 8, kind: input, shape index: {}]   ;;  %s1675_s9 = inlined_call_operand.hbm [shape: f32[2,8,32], index: 9, kind: output, shape index: {}]  }
   0x1   :  { %1677 = sst [smem:[#allocation19_spill]] %s1667_s1 }
   0x2   :  { %1678 = sst [smem:[#allocation20_spill]] %s1668_s2 }
   0x3   :  { %1679 = sst [smem:[#allocation21_spill]] %s1669_s3 }
   0x4   :  { %14 = vsyncpa [#allocation6], 0 }
   0x5   :  { %16 = vsyncpa [#allocation6 + $0x1], 0 }
   0x6   :  { %17 = vsyncpa [#allocation9], 0 }
   0x7   :  { %18 = vsyncpa [#allocation12], 0 }
   0x8   :  { %19 = vsyncpa [#allocation7], 0 }
   0x9   :  { %21 = vsyncpa [#allocation7 + $0x1], 0  ;;  %s1447_s30 = smov 0   ;;  %s1449_s10 = smov 0  }
   0xa   :  { %s1451_s11 = smov 0   ;;  %s1453_s12 = smov 0  }
   0xb   :  { %s1455_s13 = smov 0   ;;  %s1457_s14 = smov 0  }
   0xc LB: > { %s1676_s15 = sadd.s32 4294967295, %s1383_s14   ;;  %p977_p0 = scmp.ge.s32.totalorder %s1383_s14, 1  ;;  %s1383_s14 = sphi %s1457_s14, %s27_s14   ;;  %s1379_s13 = sphi %s1455_s13, %s1694_s13   ;;  %s1375_s12 = sphi %s1453_s12, %s1693_s12   ;;  %s1371_s11 = sphi %s1451_s11, %s1692_s11   ;;  %s1367_s10 = sphi %s1449_s10, %s1691_s10   ;;  %s1363_s30 = sphi %s1447_s30, %s1690_s30  }
   0xd   : > { %p1481_p1 = scmp.eq.s32.totalorder %s1676_s15, 0  ;;  %p266_p2 = scmp.lt.s32.totalorder %s1383_s14, 3 }
   0xe   : > { %s1681_s1 = sld [smem:[#allocation19_spill]]  ;;  %s1385_s21 = smov [#allocation8]  }
   0xf   : > { %p1489_p3 = pnand %p977_p0, %p266_p2  ;;  %s279_s22 = sshll.u32 %s1385_s21, 4  ;;  %s280_s22 = int_to_ptr.vmem [resolvable:$true] %s279_s22 }
  0x10   : > { %p982_p6 = scmp.ge.s32.totalorder %s1383_s14, 2  ;;  %s1684_s3 = sld [smem:[#allocation21_spill]] }
  0x11   : > { %p1032_p4 = pneg %p1489_p3  ;;  %s1386_s27 = smov 128  }
  0x12   : > { %s1387_s28 = smov 8   ;;  %s1388_s29 = smov [#allocation11]  }
  0x13   : > { %p1497_p5 = pnand %p1032_p4, %p1481_p1  ;;  %s307_s17 = sshll.u32 %s1388_s29, 4  ;;  %s308_s17 = int_to_ptr.vmem [resolvable:$true] %s307_s17 }
  0x14   : > { %s277_s19 = sshll.u32 %s1681_s1, 4  ;;  %s1685_s2 = sld [smem:[#allocation20_spill]]  ;;  %s278_s19 = int_to_ptr.hbm [resolvable:$true] %s277_s19 }
  0x15   : > { %1035 = dma.hbm_to_vmem [thread:$0]  (!%p1497_p5), %s278_s19, 512, %s280_s22, [#allocation9], %s1386_s27, %s1386_s27, %s1387_s28  }
  0x16   : > { %s305_s26 = sshll.u32 %s1684_s3, 4  ;;  %s328_s19 = sshll.u32 %s1673_s7, 4  ;;  %s306_s26 = int_to_ptr.hbm [resolvable:$true] %s305_s26  ;;  %s329_s19 = int_to_ptr.hbm [resolvable:$true] %s328_s19 }
  0x17   : > { %1041 = dma.hbm_to_vmem [thread:$0]  (!%p1497_p5), %s306_s26, 512, %s308_s17, [#allocation12], %s1386_s27, %s1386_s27, %s1387_s28  }
  0x18   : > { %s1389_s22 = smov [#allocation10]   ;;  %s1390_s18 = smov [#allocation13]  }
  0x19   : > { %s293_s29 = sshll.u32 %s1389_s22, 4  ;;  %s330_s21 = sshll.u32 %s1390_s18, 4  ;;  %s294_s29 = int_to_ptr.vmem [resolvable:$true] %s293_s29  ;;  %s331_s21 = int_to_ptr.vmem [resolvable:$true] %s330_s21 }
  0x1a   : > { %s291_s15 = sshll.u32 %s1685_s2, 4  ;;  %s39_s26 = sadd.s32 1, %s1379_s13  ;;  %s292_s15 = int_to_ptr.hbm [resolvable:$true] %s291_s15 }
  0x1b   : > { %1038 = dma.hbm_to_vmem [thread:$0]  (!%p1497_p5), %s292_s15, 512, %s294_s29, [#allocation9], %s1386_s27, %s1386_s27, %s1387_s28  }
  0x1c   : > { %1044 = dma.hbm_to_vmem [thread:$0]  (!%p1497_p5), %s329_s19, 512, %s331_s21, [#allocation12], %s1386_s27, %s1386_s27, %s1387_s28  }
  0x1d   : > { %s976_s17 = sadd.s32 4294967294, %s1383_s14   ;;  %p41_p7 = scmp.ge.s32.totalorder %s39_s26, 2 }
  0x1e   : > { %s46_s24 = sadd.s32 1, %s1371_s11  ;;  %p53_p8 = scmp.ne.s32.totalorder %s1371_s11, %s1367_s10 }
  0x1f   : > { %s1696_s26 = smov (%p41_p7, %s39_s26), 0  ;;  %p54_p9 = scmp.eq.s32.totalorder %s1383_s14, 0 }
  0x20   : > { %p59_p10 = scmp.ne.s32.totalorder %s1367_s10, %s1363_s30  ;;  %s43_s15 = ssub.s32 %s1379_s13, %s1696_s26 }
  0x21   : > { %s1686_s25 = sadd.s32 4294967295, %s1383_s14   ;;  %p44_p12 = scmp.eq.s32.totalorder %s43_s15, 0 }
  0x22   : > { %p253_p11 = scmp.eq.s32.totalorder %s1686_s25, 1  ;;  %p1535_p13 = por %p1481_p1, %p59_p10 }
  0x23   : > { %p259_p2 = scmp.eq.s32.totalorder %s976_s17, 1  ;;  %p55_p4 = por %p54_p9, %p53_p8 }
  0x24   : > { %p1539_p0 = por %p253_p11, %p53_p8  ;;  %s347_s22 = sand.u32 1, %s1371_s11  }
  0x25   : > { %s1544_s28 = scalar_select %p44_p12, %s1371_s11, %s46_s24  }
  0x26   : > { %p1546_p5 = por %p259_p2, %p59_p10  ;;  %s984_s29 = sshll.u32 %s1379_s13, 3 }
  0x27   : > { %p1057_p7 = scmp.lt.s32.totalorder %s1383_s14, 2  ;;  %s983_s18 = sshll.u32 %s347_s22, 3 }
  0x28   : > { %s355_s25 = scalar_lea.hbm %s1666_s0, %s984_s29  ;;  %s351_s2 = scalar_lea.vmem [#allocation5], %s983_s18 }
  0x29   : > { %s357_s1 = sshll.u32 %s355_s25, 4  ;;  %s359_s3 = sshll.u32 %s351_s2, 4  ;;  %s358_s1 = int_to_ptr.hbm [resolvable:$true] %s357_s1  ;;  %s360_s3 = int_to_ptr.vmem [resolvable:$true] %s359_s3 }
  0x2a   : > { %p1046_p11 = pnand %p1057_p7, %p55_p4  ;;  %s348_s17 = scalar_lea.sflag [#allocation6], %s347_s22 }
  0x2b   : > { %368 = sbr.rel (%p1489_p3) target bundleno = 1104 (0x450), region = 56  ;;  %s1559_s24 = sand.u32 (!%p1489_p3), 1, %s1367_s10  }
  0x2c   : > { %1048 = dma.hbm_to_vmem [thread:$0]  (!%p1046_p11), %s358_s1, 128, %s360_s3, %s348_s17  }
  0x2d   : > { %s986_s21 = sshll.u32 (!%p1489_p3), %s1559_s24, 3  ;;  %s371_s29 = scalar_lea.sflag (!%p1489_p3), [#allocation6], %s1559_s24 }
  0x2e   : > { %s374_s18 = scalar_lea.vmem (!%p1489_p3), [#allocation5], %s986_s21 }
  0x30   : > { %1346 = dma.done.wait (%p1535_p13), %s371_s29, 128  }
  0x31   : > { %1348 = vsyncadd (%p1535_p13), %s371_s29, 4294967168 }
  0x32   : > { %1350 = dma.done.wait (%p1481_p1), [#allocation9], 1024  }
  0x33   : > { %1352 = vsyncadd (%p1481_p1), [#allocation9], 4294966272 }
  0x34   : > { %1354 = dma.done.wait (%p1481_p1), [#allocation12], 1024  }
  0x35   : > { %1356 = vsyncadd (%p1481_p1), [#allocation12], 4294966272  ;;  %v438_v0 = vld [vmem:[#allocation10 + $0x18] sm:$0xff]  ;;  %v437_v1 = vld [vmem:[#allocation10 + $0x10] sm:$0xff]  ;;  %vm443_vm0 = vcmask 261120   ;;  %vm532_vm1 = vcmask 64512  }
  0x36   : > { %459 = vmatpush.msra.mxu0 %v438_v0  ;;  %v501_v2 = vld [vmem:[#allocation8 + $0x18] sm:$0xff]  ;;  %v436_v3 = vld [vmem:[#allocation10 + $0x8] sm:$0xff]  ;;  %v500_v4 = vld [vmem:[#allocation8 + $0x10] sm:$0xff]  ;;  %s1391_s20 = smov 104   ;;  %s1392_s23 = smov 120   ;;  %vm664_vm2 = vcmask 130112  }
  0x37   : > { %522 = vmatpush.msra.mxu2 %v501_v2  ;;  %v499_v5 = vld [vmem:[#allocation8 + $0x8] sm:$0xff]  ;;  %v435_v6 = vld [vmem:[#allocation10] sm:$0xff]  ;;  %v434_v7 = vld [vmem:[%s374_s18] sm:$0xff]  ;;  %s1393_s22 = smov 112   ;;  %s1394_s17 = smov 16   ;;  %vm735_vm3 = vcmask 195712  }
  0x38   : > { %460 = vmatpush.msra.mxu0 %v437_v1  ;;  %v498_v8 = vld [vmem:[#allocation8] sm:$0xff]  ;;  %v1123_v9 = vld [vmem:[%s1671_s5] ss:$0 sm:$0xff]  ;;  %v470_v17 = vld [vmem:[#allocation11 + $0x10] sm:$0xff]  ;;  %s1395_s29 = smov 8   ;;  %s1396_s18 = smov 24  }
  0x39   : > { %523 = vmatpush.msra.mxu2 %v500_v4  ;;  %v1124_v12 = vld [vmem:[%s1670_s4] ss:$0 sm:$0xff]  ;;  %v469_v26 = vld [vmem:[#allocation11 + $0x8] sm:$0xff]  ;;  %v468_v27 = vld [vmem:[#allocation11] sm:$0xff]  ;;  %vm806_vm4 = vcmask 261312   ;;  %s1009_s1 = sshll.u32 %s1375_s12, 3 }
  0x3a   : > { %461 = vmatpush.msra.mxu0 %v436_v3  ;;  %v471_v16 = vld [vmem:[#allocation11 + $0x18] sm:$0xff]  ;;  %s853_s16 = scalar_lea.hbm %s1675_s9, %s1009_s1  ;;  %s842_s12 = scalar_lea.sflag [#allocation7], %s1559_s24 }
  0x3b   : > { %524 = vmatpush.msra.mxu2 %v499_v5  ;;  %488 = vmatpush.msra.mxu1 %v471_v16  ;;  %v1125_v39 = vld [vmem:[%s1672_s6] ss:$0 sm:$0xff]  ;;  %v809_v16 = vld [vmem:[#allocation13] sm:$0xff]  ;;  %s857_s25 = sshll.u32 %s853_s16, 4  ;;  %s858_s25 = int_to_ptr.hbm [resolvable:$true] %s857_s25 }
  0x3c   : > { %462 = vmatpush.msra.mxu0 %v435_v6 }
  0x3d   : > { %992 = vmatmul.msk.f32.vlgmr.msra.gmra.mxu0 %vm443_vm0, %v434_v7  ;;  %525 = vmatpush.msra.mxu2 %v498_v8 }
  0x3e   : > { %994 = vmatmul.msk.f32.vlgmr.msra.gmra.mxu2 %vm443_vm0, %v434_v7  ;;  %489 = vmatpush.msra.mxu1 %v470_v17 }
  0x40   : > { %490 = vmatpush.msra.mxu1 %v469_v26 }
  0x42   : > { %491 = vmatpush.msra.mxu1 %v468_v27 }
  0x43   : > { %993 = vmatmul.msk.f32.vlgmr.msra.gmra.mxu1 %vm443_vm0, %v434_v7 }
  0xba   : > { %v464_v10 = vpop.f32.mrf.mxu0 }
  0xbb   : > { %v465_v11 = vadd.f32 %v1123_v9, %v464_v10 }
  0xbd   : > { %467 = vst.msk [vmem:[#allocation2] sm:$0xff] %vm443_vm0, %v465_v11 }
  0xc0   : > { %v493_v40 = vpop.f32.mrf.mxu1 }
  0xc1   : > { %v527_v13 = vpop.f32.mrf.mxu2  ;;  %v494_v41 = vadd.f32 %v1125_v39, %v493_v40 }
  0xc2   : > { %v528_v15 = vadd.f32 %v1124_v12, %v527_v13  ;;  %v812_v13 = vld [vmem:[#allocation13 + $0x18] sm:$0xff] }
  0xc3   : > { %496 = vst.msk [vmem:[#allocation3] sm:$0xff] %vm443_vm0, %v494_v41 }
  0xc4   : > { %v530_v14 = vld [vmem:[#allocation2] sm:$0xff] }
  0xc5   : > { %739 = vrot.lane.b32.xlu2 %v530_v14, %s1391_s20  ;;  %596 = vrot.lane.b32.xlu1 %v530_v14, %s1392_s23 }
  0xc6   : > { %668 = vrot.lane.b32.xlu0 %v530_v14, %s1393_s22  ;;  %995 = vmatpush.xpose.msk.msra.mxu3 %vm532_vm1, %v530_v14  ;;  %v811_v14 = vld [vmem:[#allocation13 + $0x10] sm:$0xff] }
  0xc9   : > { %996 = vmatmul.msk.f32.vlgmr.msra.gmra.mxu3 %vm532_vm1, %v528_v15 }
  0xca   : > { %v531_v42 = vld [vmem:[#allocation3] sm:$0xff] }
  0xcb   : > { %588 = vmatpush.msrb.mxu3 %v531_v42 }
  0xcd   : > { %737 = vrot.lane.b32.xlu2 %v528_v15, %s1391_s20  ;;  %594 = vrot.lane.b32.xlu1 %v528_v15, %s1392_s23 }
  0xce   : > { %666 = vrot.lane.b32.xlu0 %v528_v15, %s1393_s22  ;;  %v810_v15 = vld [vmem:[#allocation13 + $0x8] sm:$0xff] }
 0x11f   : > { %v740_v19 = vpop.permute.xlu2 %739 }
 0x127   : > { %v738_v23 = vpop.permute.xlu2 %737 }
 0x137   : > { %v597_v18 = vpop.permute.xlu1 %596 }
 0x138   : > { %v669_v20 = vpop.permute.xlu0 %668  ;;  %998 = vmatpush.xpose.msk.msrb.mxu0 %vm532_vm1, %v597_v18 }
 0x139   : > { %1001 = vmatpush.xpose.msk.msrb.mxu2 %vm532_vm1, %v669_v20 }
 0x13c   : > { %1004 = vmatpush.xpose.msk.msra.mxu0 %vm532_vm1, %v740_v19 }
 0x13d   : > { %832 = vmatpush.msra.mxu2 %v812_v13 }
 0x13f   : > { %v595_v21 = vpop.permute.xlu1 %594  ;;  %833 = vmatpush.msra.mxu2 %v811_v14 }
 0x140   : > { %v667_v22 = vpop.permute.xlu0 %666  ;;  %999 = vmatmul.msk.f32.vlgmr.msrb.gmra.mxu0 %vm532_vm1, %v595_v21  ;;  %v1126_v21 = vld [vmem:[%s1674_s8] ss:$0 sm:$0xff] }
 0x141   : > { %1002 = vmatmul.msk.f32.vlgmr.msrb.gmra.mxu2 %vm532_vm1, %v667_v22 }
 0x142   : > { %834 = vmatpush.msra.mxu2 %v810_v15 }
 0x144   : > { %835 = vmatpush.msra.mxu2 %v809_v16 }
 0x148   : > { %1005 = vmatmul.msk.f32.vlgmr.msra.gmra.mxu0 %vm532_vm1, %v738_v23 }
 0x14c   : > { %v556_v24 = vpop.f32.mrf.mxu3 }
 0x14d   : > { %v559_v25 = vsel %vm532_vm1, %v556_v24, -inf }
 0x14e   : > { %560 = vmax.xlane.f32.xlu0 %v559_v25 }
 0x1bd   : > { %v619_v28 = vpop.f32.mrf.mxu0 }
 0x1be   : > { %v622_v29 = vsel %vm532_vm1, %v619_v28, -inf }
 0x1bf   : > { %623 = vmax.xlane.f32.xlu1 %v622_v29 }
 0x1c1   : > { %v561_v30 = vpop.xlane.xlu0 %560 }
 0x1c2   : > { %v562_v31 = vsub.f32 %v556_v24, %v561_v30 }
 0x1c4   : > { %v563_v32 = vmul.f32 1.442695, %v562_v31  ;;  %v691_v33 = vpop.f32.mrf.mxu2 }
 0x1c5   : > { %v694_v34 = vsel %vm532_vm1, %v691_v33, -inf  ;;  %v762_v35 = vpop.f32.mrf.mxu0 }
 0x1c6   : > { %1127 = vpow2.f32 %v563_v32  ;;  %695 = vmax.xlane.f32.xlu2 %v694_v34  ;;  %v765_v37 = vsel %vm532_vm1, %v762_v35, -inf }
 0x1cc   : > { %v1128_v36 = vpop.eup %1127 }
 0x1cd   : > { %v565_v38 = vsel %vm532_vm1, %v1128_v36, 0.0 }
 0x1ce   : > { %766 = vmax.xlane.f32.xlu2 %v765_v37  ;;  %566 = vadd.xlane.f32.xlu0 %v565_v38 }
 0x232   : > { %v624_v43 = vpop.xlane.xlu1 %623 }
 0x233   : > { %v625_v44 = vsub.f32 %v619_v28, %v624_v43 }
 0x235   : > { %v626_v45 = vmul.f32 1.442695, %v625_v44 }
 0x237   : > { %1129 = vpow2.f32 %v626_v45 }
 0x239   : > { %v696_v46 = vpop.xlane.xlu2 %695 }
 0x23a   : > { %v697_v47 = vsub.f32 %v691_v33, %v696_v46 }
 0x23c   : > { %v698_v48 = vmul.f32 1.442695, %v697_v47 }
 0x23d   : > { %v1130_v49 = vpop.eup %1129 }
 0x23e   : > { %1131 = vpow2.f32 %v698_v48  ;;  %v628_v50 = vsel %vm532_vm1, %v1130_v49, 0.0 }
 0x23f   : > { %629 = vadd.xlane.f32.xlu1 %v628_v50 }
 0x241   : > { %v767_v51 = vpop.xlane.xlu2 %766  ;;  %v567_v52 = vpop.xlane.xlu0 %566 }
 0x242   : > { %v768_v53 = vsub.f32 %v762_v35, %v767_v51  ;;  %1133 = vrcp.f32 %v567_v52 }
 0x244   : > { %v1132_v54 = vpop.eup %1131  ;;  %v769_v55 = vmul.f32 1.442695, %v768_v53 }
 0x245   : > { %v700_v56 = vsel %vm532_vm1, %v1132_v54, 0.0 }
 0x246   : > { %1135 = vpow2.f32 %v769_v55  ;;  %701 = vadd.xlane.f32.xlu2 %v700_v56 }
 0x248   : > { %v1134_v57 = vpop.eup %1133 }
 0x249   : > { %v569_v58 = vmul.f32 %v1134_v57, %v1128_v36 }
 0x24b   : > { %997 = vmatmul.msk.f32.vlgmr.msrb.gmra.mxu3 %vm532_vm1, %v569_v58 }
 0x24c   : > { %v1136_v59 = vpop.eup %1135 }
 0x24d   : > { %v771_v60 = vsel %vm532_vm1, %v1136_v59, 0.0 }
 0x24e   : > { %772 = vadd.xlane.f32.xlu0 %v771_v60 }
 0x258   : > { %634 = vrot.lane.b32.xlu1 %v531_v42, %s1392_s23 }
 0x25e   : > { %705 = vrot.lane.b32.xlu2 %v531_v42, %s1393_s22  ;;  %s429_s22 = scalar_lea.vmem [#allocation14], %s986_s21  ;;  %s1313_s21 = scalar_lea.hbm %s1675_s9, 16 }
 0x25f   : > { %s855_s15 = sshll.u32 %s429_s22, 4  ;;  %s856_s15 = int_to_ptr.vmem [resolvable:$true] %s855_s15 }
 0x262   : > { %776 = vrot.lane.b32.xlu0 %v531_v42, %s1391_s20 }
 0x2b2   : > { %v630_v62 = vpop.xlane.xlu1 %629 }
 0x2b9   : > { %v702_v61 = vpop.xlane.xlu2 %701 }
 0x2ba   : > { %1137 = vrcp.f32 %v702_v61 }
 0x2bb   : > { %1139 = vrcp.f32 %v630_v62 }
 0x2c0   : > { %v1138_v63 = vpop.eup %1137 }
 0x2c1   : > { %v704_v0 = vmul.f32 %v1138_v63, %v1132_v54  ;;  %v706_v1 = vpop.permute.xlu2 %705  ;;  %v1140_v2 = vpop.eup %1139 }
 0x2c2   : > { %726 = vmatpush.msra.mxu3 %v706_v1  ;;  %v773_v3 = vpop.xlane.xlu0 %772  ;;  %v632_v5 = vmul.f32 %v1140_v2, %v1130_v49 }
 0x2c3   : > { %1003 = vmatmul.msk.f32.vlgmr.msra.gmra.mxu3 %vm532_vm1, %v704_v0  ;;  %1141 = vrcp.f32 %v773_v3 }
 0x2c9   : > { %v1142_v7 = vpop.eup %1141 }
 0x2ca   : > { %v635_v4 = vpop.permute.xlu1 %634  ;;  %v775_v8 = vmul.f32 %v1142_v7, %v1136_v59 }
 0x2cb   : > { %655 = vmatpush.msrb.mxu1 %v635_v4 }
 0x2cc   : > { %1000 = vmatmul.msk.f32.vlgmr.msrb.gmra.mxu1 %vm532_vm1, %v632_v5 }
 0x2ce   : > { %v590_v6 = vpop.f32.mrf.mxu3 }
 0x2cf   : > { %593 = vst.msk [vmem:[#allocation4] sm:$0xff] %vm532_vm1, %v590_v6 }
 0x2d4   : > { %v777_v9 = vpop.permute.xlu0 %776 }
 0x2d5   : > { %797 = vmatpush.msra.mxu1 %v777_v9 }
 0x2d6   : > { %1006 = vmatmul.msk.f32.vlgmr.msra.gmra.mxu1 %vm532_vm1, %v775_v8 }
 0x346   : > { %v728_v10 = vpop.f32.mrf.mxu3 }
 0x347   : > { %732 = vrot.lane.b32.xlu0 %v728_v10, %s1394_s17  ;;  %s1307_s17 = sshra.s32 %s858_s25, 4  ;;  %s1308_s17 = int_to_ptr.hbm [resolvable:$true] %s1307_s17 }
 0x348   : > { %p1314_p9 = scmp.lt.s32.totalorder %s1308_s17, %s1675_s9 }
 0x349   : > { %v657_v11 = vpop.f32.mrf.mxu1 }
 0x34a   : > { %661 = vrot.lane.b32.xlu1 %v657_v11, %s1395_s29  ;;  %s1309_s29 = scalar_lea.hbm %s1308_s17, 8 }
 0x34b   : > { %p1310_p1 = scmp.ne.s32.totalorder %s1308_s17, %s1309_s29  ;;  %p1315_p10 = scmp.lt.s32.totalorder %s1313_s21, %s1309_s29 }
 0x34d   : > { %p1311_p3 = pnand %p1310_p1, %p1539_p0  ;;  %p1316_p12 = por %p1315_p10, %p1314_p9 }
 0x34f   : > { %p1312_p8 = pneg %p1311_p3 }
 0x351   : > { %p1317_p13 = pnand %p1316_p12, %p1312_p8 }
 0x353   : > { %v799_v12 = vpop.f32.mrf.mxu1 }
 0x354   : > { %803 = vrot.lane.b32.xlu2 %v799_v12, %s1396_s18 }
 0x3ae   : > { %v804_v19 = vpop.permute.xlu2 %803 }
 0x3b9   : > { %v733_v18 = vpop.permute.xlu0 %732 }
 0x3bc   : > { %v662_v17 = vpop.permute.xlu1 %661 }
 0x3bd   : > { %665 = vst.msk [vmem:[#allocation4] sm:$0xff] %vm664_vm2, %v662_v17 }
 0x3be   : > { %736 = vst.msk [vmem:[#allocation4] sm:$0xff] %vm735_vm3, %v733_v18 }
 0x3bf   : > { %807 = vst.msk [vmem:[#allocation4] sm:$0xff] %vm806_vm4, %v804_v19 }
 0x3c6   : > { %v808_v20 = vld [vmem:[#allocation4] sm:$0xff] }
 0x3c7   : > { %1007 = vmatmul.msk.f32.vlgmr.msra.gmra.mxu2 %vm443_vm0, %v808_v20 }
 0x44a   : > { %v837_v22 = vpop.f32.mrf.mxu2 }
 0x44b   : > { %v838_v23 = vadd.f32 %v1126_v21, %v837_v22 }
 0x44d   : > { %840 = vst.msk [vmem:[%s429_s22] sm:$0xff] %vm443_vm0, %v838_v23 }
 0x44e   : > { %1320 = shalt.err (!%p1317_p13)
}
 0x44f   : > { %1030 = dma.vmem_to_hbm [thread:$0]  (%p1539_p0), %s856_s15, 128, %s858_s25, %s842_s12  }
 0x450 PF: > { %s869_s24 = sand.u32 1, %s1363_s30   ;;  %p1050_p2 = pnand %p982_p6, %p1546_p5 }
 0x451   : > { %s870_s16 = scalar_lea.sflag [#allocation7], %s869_s24 }
 0x452   : > { %p1051_p4 = pneg %p1050_p2 }
 0x454   : > { %1358 = dma.done.wait (%p1051_p4), %s870_s16, 128  }
 0x455   : > { %1360 = vsyncadd (%p1051_p4), %s870_s16, 4294967168  ;;  %s27_s14 = sadd.s32 1, %s1383_s14   ;;  %s1690_s30 = smov %s1367_s10 }
 0x456   : > { %p24_p7 = scmp.ge.s32.totalorder %s27_s14, 4   ;;  %s1691_s10 = smov %s1371_s11 }
 0x457   : > { %s1692_s11 = smov %s1544_s28  ;;  %s1693_s12 = smov %s1379_s13 }
 0x458   : > { %s1694_s13 = smov %s1696_s26  ;;  %26 = sbr.rel (!%p24_p7) target bundleno = 12 (0xc), region = 121 }
 0x45d   :  { %876 = vsyncpa [#allocation6], 1 }
 0x45e   :  { %878 = vsyncpa [#allocation6 + $0x1], 1 }
 0x45f   :  { %879 = vsyncpa [#allocation9], 1 }
 0x460   :  { %880 = vsyncpa [#allocation12], 1 }
 0x461   :  { %881 = vsyncpa [#allocation7], 1 }
 0x462   :  { %883 = vsyncpa [#allocation7 + $0x1], 1 }

</bundles_post_ra>
